<compile_context>
chip_gen: v5e
topology: v5e:2x2
jax: 0.10.0
libtpu: 0.0.40
codegen_flags: <defaults>
</compile_context>

<pallas_src>
import jax
import jax.numpy as jnp
from jax.experimental import pallas as pl
from jax.experimental.pallas import tpu as pltpu

LANE = 128      # TPU lane width (hidden dim is padded to this once, at init)
SUBLANE = 8     # TPU sublane width (row tiles are multiples of this)


def _round_up(x, m):
    return (x + m - 1) // m * m


def _tc_count():
    """Best-effort TensorCore count per chip (2 on v7x, else 1)."""
    try:
        kind = jax.devices()[0].device_kind.lower()
    except Exception:
        return 1
    return 2 if "v7" in kind else 1


# --------------------------------------------------------------------------
# Kernels
# --------------------------------------------------------------------------

def actor_mlp_kernel(x_ref, w1_ref, b1_ref, w2_ref, b2_ref, out_ref):
    """probs = softmax(relu(x @ w1 + b1) @ w2 + b2), exact normalization."""
    x = x_ref[...]
    h = jnp.dot(x, w1_ref[...], preferred_element_type=jnp.float32) + b1_ref[...]
    h = jnp.maximum(h, 0.0)
    logits = jnp.dot(h, w2_ref[...], preferred_element_type=jnp.float32) + b2_ref[...]

    m = jnp.max(logits, axis=-1, keepdims=True)
    e = jnp.exp(logits - m)
    denom = jnp.sum(e, axis=-1, keepdims=True)
    out_ref[...] = (e / denom).astype(out_ref.dtype)   # exact divide: rows sum to 1


def actor_sample_kernel(x_ref, w1_ref, b1_ref, w2_ref, b2_ref, u_ref,
                        action_ref, logp_ref):
    """Fused forward + Categorical sample (inverse-CDF) + log-prob, on-chip.

    Uses one uniform per row (supplied from the wrapper) and reuses the softmax
    numerator/denominator, so the only transcendentals are exp(logits) and one
    per-row log(denom) -- no Gumbel logs, no hardware PRNG.
    """
    x = x_ref[...]
    h = jnp.dot(x, w1_ref[...], preferred_element_type=jnp.float32) + b1_ref[...]
    h = jnp.maximum(h, 0.0)
    logits = jnp.dot(h, w2_ref[...], preferred_element_type=jnp.float32) + b2_ref[...]
    n_out = logits.shape[-1]

    # softmax pieces (exact)
    m = jnp.max(logits, axis=-1, keepdims=True)
    e = jnp.exp(logits - m)                              # (tb, n_out)
    denom = jnp.sum(e, axis=-1, keepdims=True)           # (tb, 1)

    # inverse-CDF sampling:  action = #{j : cumsum(e)[j] <= u * denom}
    # cumulative sum over the (small) output lanes via an upper-triangular matmul
    # (runs on the MXU slot, which is idle here).
    row = jax.lax.broadcasted_iota(jnp.int32, (n_out, n_out), 0)
    col = jax.lax.broadcasted_iota(jnp.int32, (n_out, n_out), 1)
    tri = (row <= col).astype(jnp.float32)               # tri[i, j] = 1 if i <= j
    csum = jnp.dot(e, tri, preferred_element_type=jnp.float32)   # csum[:, j] = sum_{i<=j} e[:, i]
    thresh = u_ref[...] * denom                           # (tb, 1)
    action = jnp.sum((csum <= thresh).astype(jnp.int32), axis=-1, keepdims=True)
    action = jnp.minimum(action, n_out - 1)               # guard fp-rounding at u ~ 1

    # log-prob of the chosen action (exact log-softmax at that lane)
    lane = jax.lax.broadcasted_iota(jnp.int32, logits.shape, 1)
    logp_all = (logits - m) - jnp.log(denom)
    logp = jnp.sum(jnp.where(lane == action, logp_all, 0.0), axis=-1, keepdims=True)

    action_ref[...] = action.astype(action_ref.dtype)
    logp_ref[...] = logp.astype(logp_ref.dtype)


# --------------------------------------------------------------------------
# Parameter init (canonical layout, done ONCE: pre-transposed, hidden padded)
# --------------------------------------------------------------------------

def init_actor_params(key, input_size, hidden_size, output_size):
    """PyTorch nn.Linear default init U(-1/sqrt(fan_in), 1/sqrt(fan_in)).

    Returns (params, torch_layout):
      params:       pre-transposed weights in kernel layout:
                      w1: (input_size, hid_p)   b1: (1, hid_p)
                      w2: (hid_p, output_size)  b2: (1, output_size)
                    (hid_p = hidden padded to 128 lanes; zero padding is inert.)
      torch_layout: the original (out, in) weights / (out,) biases for reference.
    """
    k1w, k1b, k2w, k2b = jax.random.split(key, 4)
    bound1 = 1.0 / jnp.sqrt(jnp.float32(input_size))
    bound2 = 1.0 / jnp.sqrt(jnp.float32(hidden_size))
    w1 = jax.random.uniform(k1w, (hidden_size, input_size), jnp.float32, -bound1, bound1)
    b1 = jax.random.uniform(k1b, (hidden_size,), jnp.float32, -bound1, bound1)
    w2 = jax.random.uniform(k2w, (output_size, hidden_size), jnp.float32, -bound2, bound2)
    b2 = jax.random.uniform(k2b, (output_size,), jnp.float32, -bound2, bound2)

    hid_p = _round_up(hidden_size, LANE)
    params = {
        "w1": jnp.zeros((input_size, hid_p), jnp.float32).at[:, :hidden_size].set(w1.T),
        "b1": jnp.zeros((1, hid_p), jnp.float32).at[0, :hidden_size].set(b1),
        "w2": jnp.zeros((hid_p, output_size), jnp.float32).at[:hidden_size, :].set(w2.T),
        "b2": b2[None, :],
        "sizes": (input_size, hidden_size, output_size),
    }
    return params, (w1, b1, w2, b2)


# --------------------------------------------------------------------------
# Wrappers
# --------------------------------------------------------------------------

def _batch_layout(B, block_b, n_cores):
    """Pick (row_tile, padded_rows). Single grid step on 1-TC chips; >=2 on v7x."""
    block_b = max(SUBLANE, (block_b // SUBLANE) * SUBLANE)
    if B <= SUBLANE:
        return B, B                                   # block rows == full batch: exempt from 8-row rule
    if n_cores > 1 and B >= 2 * SUBLANE:
        tb = _round_up(pl.cdiv(B, n_cores), SUBLANE)  # >=2 grid steps so both TensorCores engage
    else:
        tb = _round_up(B, SUBLANE)                    # single TC: one grid step if it fits
    tb = min(tb, block_b)
    b_pad = _round_up(B, tb)
    return tb, b_pad


def _pad_rows(x, b_pad, input_size):
    B = x.shape[0]
    if b_pad == B:
        return x.astype(jnp.float32)
    return jnp.zeros((b_pad, input_size), jnp.float32).at[:B].set(x.astype(jnp.float32))


def _weight_specs(params):
    return [
        pl.BlockSpec(params["w1"].shape, lambda i: (0, 0)),
        pl.BlockSpec(params["b1"].shape, lambda i: (0, 0)),
        pl.BlockSpec(params["w2"].shape, lambda i: (0, 0)),
        pl.BlockSpec(params["b2"].shape, lambda i: (0, 0)),
    ]


def actor_forward_batch(params, x, *, block_b=512):
    """x: (B, input_size) -> (B, output_size) softmax probs."""
    input_size, _, output_size = params["sizes"]
    B = x.shape[0]
    tb, b_pad = _batch_layout(B, block_b, _tc_count())
    xp = _pad_rows(x, b_pad, input_size)

    probs = pl.pallas_call(
        actor_mlp_kernel,
        out_shape=jax.ShapeDtypeStruct((b_pad, output_size), jnp.float32),
        grid=(b_pad // tb,),
        in_specs=[pl.BlockSpec((tb, input_size), lambda i: (i, 0))] + _weight_specs(params),
        out_specs=pl.BlockSpec((tb, output_size), lambda i: (i, 0)),
        compiler_params=pltpu.CompilerParams(
            dimension_semantics=("parallel",)),   # v7x: both TCs split the batch axis
    )(xp, params["w1"], params["b1"], params["w2"], params["b2"])
    return probs if b_pad == B else probs[:B]


def actor_forward(params, observation):
    """Single observation (input_size,) -> (1, output_size). Matches Actor.forward."""
    return actor_forward_batch(params, observation[None, :])


def actor_sample_batch(params, x, key, *, block_b=512):
    """Fused forward + Categorical sampling. Returns (actions (B,), log_probs (B,))."""
    input_size, _, output_size = params["sizes"]
    B = x.shape[0]
    tb, b_pad = _batch_layout(B, block_b, _tc_count())
    xp = _pad_rows(x, b_pad, input_size)
    u = jax.random.uniform(key, (b_pad, 1), jnp.float32)   # one uniform per row

    actions, logps = pl.pallas_call(
        actor_sample_kernel,
        out_shape=(jax.ShapeDtypeStruct((b_pad, 1), jnp.int32),
                   jax.ShapeDtypeStruct((b_pad, 1), jnp.float32)),
        grid=(b_pad // tb,),
        in_specs=[pl.BlockSpec((tb, input_size), lambda i: (i, 0))] + _weight_specs(params)
                 + [pl.BlockSpec((tb, 1), lambda i: (i, 0))],
        out_specs=(pl.BlockSpec((tb, 1), lambda i: (i, 0)),
                   pl.BlockSpec((tb, 1), lambda i: (i, 0))),
        compiler_params=pltpu.CompilerParams(dimension_semantics=("parallel",)),
    )(xp, params["w1"], params["b1"], params["w2"], params["b2"], u)

    actions = actions[:, 0]
    logps = logps[:, 0]
    if b_pad != B:
        actions, logps = actions[:B], logps[:B]
    return actions, logps


# --------------------------------------------------------------------------
# Pure-JAX reference (PyTorch semantics) for correctness checks
# --------------------------------------------------------------------------

def ref_forward_batch(torch_params, x):
    w1, b1, w2, b2 = torch_params
    hp = jax.lax.Precision.HIGHEST
    h = jnp.maximum(jnp.dot(x, w1.T, precision=hp) + b1, 0.0)
    logits = jnp.dot(h, w2.T, precision=hp) + b2
    return jax.nn.softmax(logits, axis=1)


if __name__ == "__main__":
    input_size, hidden_size, output_size = 16, 32, 8

    key = jax.random.PRNGKey(0)
    k_obs, k_params, k_batch, k_sample = jax.random.split(key, 4)
    params, torch_params = init_actor_params(k_params, input_size, hidden_size, output_size)

    # --- Single-observation path (matches Actor.forward: unsqueeze(0) -> probs (1, out)) ---
    observation = jax.random.normal(k_obs, (input_size,), jnp.float32)
    probs = jax.block_until_ready(actor_forward(params, observation))
    assert probs.shape == (1, output_size)
    ref = ref_forward_batch(torch_params, observation[None, :])
    assert jnp.allclose(probs, ref, atol=2e-3), (probs, ref)
    assert jnp.allclose(jnp.sum(probs, axis=1), 1.0, atol=1e-5)

    # --- Batched path (rollout shape; batch rows along the sublane axis) ---
    B = 64
    obs_batch = jax.random.normal(k_batch, (B, input_size), jnp.float32)
    probs_b = jax.block_until_ready(actor_forward_batch(params, obs_batch))
    assert probs_b.shape == (B, output_size)
    ref_b = ref_forward_batch(torch_params, obs_batch)
    assert jnp.allclose(probs_b, ref_b, atol=2e-3)

    # --- Ragged batch (exercises the row-pad / trim path) ---
    B2 = 20
    obs_b2 = jax.random.normal(jax.random.PRNGKey(7), (B2, input_size), jnp.float32)
    probs_b2 = jax.block_until_ready(actor_forward_batch(params, obs_b2))
    assert probs_b2.shape == (B2, output_size)
    assert jnp.allclose(probs_b2, ref_forward_batch(torch_params, obs_b2), atol=2e-3)

    # --- Fused forward + Categorical sampling (replaces get_action's host round-trip) ---
    actions, logps = actor_sample_batch(params, obs_batch, k_sample)
    actions = jax.block_until_ready(actions)
    logps = jax.block_until_ready(logps)
    assert actions.shape == (B,) and logps.shape == (B,)
    assert bool(jnp.all((actions >= 0) & (actions < output_size)))
    ref_logp = jnp.log(ref_b)[jnp.arange(B), actions]
    assert jnp.allclose(logps, ref_logp, atol=2e-3), (logps, ref_logp)

    print("KERNEL_OK")
</pallas_src>

<mosaic_0001>
module attributes {stable_mosaic.version = 11 : i64} {
  func.func @actor_mlp_kernel(%arg0: i32, %arg1: memref<1x16xf32, #tpu.memory_space<vmem>>, %arg2: memref<16x128xf32, #tpu.memory_space<vmem>>, %arg3: memref<1x128xf32, #tpu.memory_space<vmem>>, %arg4: memref<128x8xf32, #tpu.memory_space<vmem>>, %arg5: memref<1x8xf32, #tpu.memory_space<vmem>>, %arg6: memref<1x8xf32, #tpu.memory_space<vmem>>) attributes {dimension_semantics = [#tpu.dimension_semantics<parallel>], iteration_bounds = array<i64: 1>, scalar_prefetch = 0 : i64, scratch_operands = 0 : i64, tpu.core_type = #tpu.core_type<tc>, window_params = [{transform_indices = @transform_0, window_bounds = array<i64: 1, 16>}, {pipeline_mode = #tpu.pipeline_mode<synchronous>, transform_indices = @transform_1, window_bounds = array<i64: 16, 128>}, {pipeline_mode = #tpu.pipeline_mode<synchronous>, transform_indices = @transform_2, window_bounds = array<i64: 1, 128>}, {pipeline_mode = #tpu.pipeline_mode<synchronous>, transform_indices = @transform_3, window_bounds = array<i64: 128, 8>}, {pipeline_mode = #tpu.pipeline_mode<synchronous>, transform_indices = @transform_4, window_bounds = array<i64: 1, 8>}, {transform_indices = @transform_5, window_bounds = array<i64: 1, 8>}]} {
    %c0 = arith.constant 0 : index
    %c0_0 = arith.constant 0 : index
    %0 = vector.load %arg1[%c0, %c0_0] : memref<1x16xf32, #tpu.memory_space<vmem>>, vector<1x16xf32>
    %c0_1 = arith.constant 0 : index
    %c0_2 = arith.constant 0 : index
    %1 = vector.load %arg2[%c0_1, %c0_2] : memref<16x128xf32, #tpu.memory_space<vmem>>, vector<16x128xf32>
    %cst = arith.constant dense<0.000000e+00> : vector<1x128xf32>
    %2 = tpu.matmul %0, %1, %cst {dimension_numbers = #tpu.dot_dimension_numbers<[1], [0], [0], [1], [0, 0, 1, 1], [], []>} : vector<1x16xf32>, vector<16x128xf32>, vector<1x128xf32> -> vector<1x128xf32>
    %c0_3 = arith.constant 0 : index
    %c0_4 = arith.constant 0 : index
    %3 = vector.load %arg3[%c0_3, %c0_4] : memref<1x128xf32, #tpu.memory_space<vmem>>, vector<1x128xf32>
    %4 = arith.addf %2, %3 : vector<1x128xf32>
    %cst_5 = arith.constant 0.000000e+00 : f32
    %5 = vector.broadcast %cst_5 : f32 to vector<1x128xf32>
    %6 = arith.maximumf %4, %5 : vector<1x128xf32>
    %c0_6 = arith.constant 0 : index
    %c0_7 = arith.constant 0 : index
    %7 = vector.load %arg4[%c0_6, %c0_7] : memref<128x8xf32, #tpu.memory_space<vmem>>, vector<128x8xf32>
    %cst_8 = arith.constant dense<0.000000e+00> : vector<1x8xf32>
    %8 = tpu.matmul %6, %7, %cst_8 {dimension_numbers = #tpu.dot_dimension_numbers<[1], [0], [0], [1], [0, 0, 1, 1], [], []>} : vector<1x128xf32>, vector<128x8xf32>, vector<1x8xf32> -> vector<1x8xf32>
    %c0_9 = arith.constant 0 : index
    %c0_10 = arith.constant 0 : index
    %9 = vector.load %arg5[%c0_9, %c0_10] : memref<1x8xf32, #tpu.memory_space<vmem>>, vector<1x8xf32>
    %10 = arith.addf %8, %9 : vector<1x8xf32>
    %cst_11 = arith.constant dense<0xFF800000> : vector<1xf32>
    %11 = vector.multi_reduction <maximumf>, %10, %cst_11 [1] : vector<1x8xf32> to vector<1xf32>
    %12 = vector.shape_cast %11 : vector<1xf32> to vector<1x1xf32>
    %13 = vector.broadcast %12 : vector<1x1xf32> to vector<1x8xf32>
    %14 = arith.subf %10, %13 : vector<1x8xf32>
    %15 = math.exp %14 : vector<1x8xf32>
    %cst_12 = arith.constant dense<0.000000e+00> : vector<1xf32>
    %16 = vector.multi_reduction <add>, %15, %cst_12 [1] : vector<1x8xf32> to vector<1xf32>
    %17 = vector.shape_cast %16 : vector<1xf32> to vector<1x1xf32>
    %18 = vector.broadcast %17 : vector<1x1xf32> to vector<1x8xf32>
    %19 = arith.divf %15, %18 : vector<1x8xf32>
    %c0_13 = arith.constant 0 : index
    %c0_14 = arith.constant 0 : index
    %20 = vector.load %arg6[%c0_13, %c0_14] : memref<1x8xf32, #tpu.memory_space<vmem>>, vector<1x8xf32>
    tpu.vector_store %arg6[%c0_13, %c0_14], %19 {strides = array<i32>} : memref<1x8xf32, #tpu.memory_space<vmem>>, vector<1x8xf32>,
    return
  }
  func.func @transform_0(%arg0: i32) -> (i32, i32) {
    %c0_i32 = arith.constant 0 : i32
    %c0_i32_0 = arith.constant 0 : i32
    return %arg0, %c0_i32 : i32, i32
  }
  func.func @transform_1(%arg0: i32) -> (i32, i32) {
    %c0_i32 = arith.constant 0 : i32
    %c0_i32_0 = arith.constant 0 : i32
    %c0_i32_1 = arith.constant 0 : i32
    return %c0_i32, %c0_i32_0 : i32, i32
  }
  func.func @transform_2(%arg0: i32) -> (i32, i32) {
    %c0_i32 = arith.constant 0 : i32
    %c0_i32_0 = arith.constant 0 : i32
    %c0_i32_1 = arith.constant 0 : i32
    return %c0_i32, %c0_i32_0 : i32, i32
  }
  func.func @transform_3(%arg0: i32) -> (i32, i32) {
    %c0_i32 = arith.constant 0 : i32
    %c0_i32_0 = arith.constant 0 : i32
    %c0_i32_1 = arith.constant 0 : i32
    return %c0_i32, %c0_i32_0 : i32, i32
  }
  func.func @transform_4(%arg0: i32) -> (i32, i32) {
    %c0_i32 = arith.constant 0 : i32
    %c0_i32_0 = arith.constant 0 : i32
    %c0_i32_1 = arith.constant 0 : i32
    return %c0_i32, %c0_i32_0 : i32, i32
  }
  func.func @transform_5(%arg0: i32) -> (i32, i32) {
    %c0_i32 = arith.constant 0 : i32
    %c0_i32_0 = arith.constant 0 : i32
    return %arg0, %c0_i32 : i32, i32
  }
}

</mosaic_0001>

<bundles_post_ra>
// kernel: tpu_custom_call.1
= control target key start
LH: loop header
LB: loop body
LE: loop exit
PB: predicated region body
PF: predicated region fallthrough
CT: control target
= control target key end

     0   :  { %vm25_vm0 = vcmask 130048   ;;  %s261_s0 = inlined_call_operand.vmem [shape: f32[1,16], index: 0, kind: input, shape index: {}]   ;;  %s262_s1 = inlined_call_operand.vmem [shape: f32[16,128], index: 1, kind: input, shape index: {}]   ;;  %s263_s2 = inlined_call_operand.vmem [shape: f32[1,128], index: 2, kind: input, shape index: {}]   ;;  %s264_s3 = inlined_call_operand.vmem [shape: f32[128,8], index: 3, kind: input, shape index: {}]   ;;  %s265_s4 = inlined_call_operand.vmem [shape: f32[1,8], index: 4, kind: input, shape index: {}]   ;;  %s266_s5 = inlined_call_operand.hbm [shape: f32[1,8], index: 5, kind: output, shape index: {}]  }
   0x1   :  { %v23_v0 = vld [vmem:[%s262_s1 + $0x8] sm:$0xff]  ;;  %v22_v1 = vld [vmem:[%s262_s1] sm:$0xff]  ;;  %v65_v3 = vld [vmem:[%s264_s3 + $0x78] sm:$0xff] }
   0x2   :  { %43 = vmatpush.msra.mxu0 %v23_v0  ;;  %v21_v2 = vld [vmem:[%s261_s0] sm:$0x1]  ;;  %v64_v4 = vld [vmem:[%s264_s3 + $0x70] sm:$0xff]  ;;  %67 = vmatpush.msra.mxu1 %v65_v3  ;;  %v63_v5 = vld [vmem:[%s264_s3 + $0x68] sm:$0xff] }
   0x3   :  { %v62_v6 = vld [vmem:[%s264_s3 + $0x60] sm:$0xff] }
   0x4   :  { %44 = vmatpush.msra.mxu0 %v22_v1  ;;  %68 = vmatpush.msra.mxu1 %v64_v4 }
   0x5   :  { %129 = vmatmul.msk.f32.vlgmr.msra.gmra.mxu0 %vm25_vm0, %v21_v2 }
   0x6   :  { %10 = vsyncpa [#allocation3], 0  ;;  %69 = vmatpush.msra.mxu1 %v63_v5  ;;  %v61_v7 = vld [vmem:[%s264_s3 + $0x58] sm:$0xff]  ;;  %v60_v8 = vld [vmem:[%s264_s3 + $0x50] sm:$0xff]  ;;  %vm87_vm1 = vcmask 57344   ;;  %s120_s7 = sshll.u32 %s266_s5, 4  ;;  %s121_s7 = int_to_ptr.hbm [resolvable:$true] %s120_s7 }
   0x7   :  { %v59_v9 = vld [vmem:[%s264_s3 + $0x48] sm:$0xff]  ;;  %v58_v10 = vld [vmem:[%s264_s3 + $0x40] sm:$0xff]  ;;  %v57_v11 = vld [vmem:[%s264_s3 + $0x38] sm:$0xff] }
   0x8   :  { %70 = vmatpush.msra.mxu1 %v62_v6  ;;  %v56_v12 = vld [vmem:[%s264_s3 + $0x30] sm:$0xff]  ;;  %v55_v13 = vld [vmem:[%s264_s3 + $0x28] sm:$0xff]  ;;  %v54_v14 = vld [vmem:[%s264_s3 + $0x20] sm:$0xff] }
   0x9   :  { %v53_v15 = vld [vmem:[%s264_s3 + $0x18] sm:$0xff]  ;;  %v52_v16 = vld [vmem:[%s264_s3 + $0x10] sm:$0xff]  ;;  %v51_v17 = vld [vmem:[%s264_s3 + $0x8] sm:$0xff] }
   0xa   :  { %71 = vmatpush.msra.mxu1 %v61_v7  ;;  %v50_v18 = vld [vmem:[%s264_s3] sm:$0xff] }
   0xb   :  { %v24_v19 = vld [vmem:[%s263_s2] sm:$0x1]  ;;  %s161_s2 = smov [#allocation2]  }
   0xc   :  { %72 = vmatpush.msra.mxu1 %v60_v8  ;;  %v66_v23 = vld [vmem:[%s265_s4] sm:$0x1]  ;;  %s118_s3 = sshll.u32 %s161_s2, 4  ;;  %s119_s3 = int_to_ptr.vmem [resolvable:$true] %s118_s3 }
   0xe   :  { %73 = vmatpush.msra.mxu1 %v59_v9 }
  0x10   :  { %74 = vmatpush.msra.mxu1 %v58_v10 }
  0x12   :  { %75 = vmatpush.msra.mxu1 %v57_v11 }
  0x14   :  { %76 = vmatpush.msra.mxu1 %v56_v12 }
  0x16   :  { %77 = vmatpush.msra.mxu1 %v55_v13 }
  0x18   :  { %78 = vmatpush.msra.mxu1 %v54_v14 }
  0x1a   :  { %79 = vmatpush.msra.mxu1 %v53_v15 }
  0x1c   :  { %80 = vmatpush.msra.mxu1 %v52_v16 }
  0x1e   :  { %81 = vmatpush.msra.mxu1 %v51_v17 }
  0x20   :  { %82 = vmatpush.msra.mxu1 %v50_v18 }
  0x82   :  { %v46_v20 = vpop.f32.mrf.mxu0 }
  0x83   :  { %v47_v21 = vadd.f32 %v46_v20, %v24_v19 }
  0x85   :  { %v49_v22 = vmax.f32 %v47_v21, 0.0 }
  0x87   :  { %83 = vmatmul.f32.vlgmr.msra.gmra.mxu1 %v49_v22 }
 0x104   :  { %v84_v24 = vpop.f32.mrf.mxu1 }
 0x105   :  { %v85_v25 = vadd.f32 %v84_v24, %v66_v23 }
 0x107   :  { %v88_v26 = vsel %vm87_vm1, %v85_v25, -inf }
 0x108   :  { %89 = vmax.xlane.f32.xlu0 %v88_v26 }
 0x17b   :  { %v90_v27 = vpop.xlane.xlu0 %89 }
 0x17c   :  { %v91_v28 = vsub.f32 %v85_v25, %v90_v27 }
 0x17e   :  { %v92_v29 = vmul.f32 1.442695, %v91_v28 }
 0x180   :  { %131 = vpow2.f32 %v92_v29 }
 0x186   :  { %v132_v30 = vpop.eup %131 }
 0x187   :  { %v94_v31 = vsel %vm87_vm1, %v132_v30, 0.0 }
 0x188   :  { %95 = vadd.xlane.f32.xlu0 %v94_v31 }
 0x1fb   :  { %v96_v32 = vpop.xlane.xlu0 %95 }
 0x1fc   :  { %133 = vrcp.f32 %v96_v32  ;;  %v108_v36 = vand.u32 2147483648, %v96_v32  ;;  %v106_v38 = vand.u32 2147483647, %v96_v32  ;;  %vm102_vm3 = vweird.f32 %v96_v32 }
 0x1fe   :  { %v109_v40 = vor.u32 1.1754944e-38, %v108_v36  ;;  %vm107_vm5 = vcmp.eq.f32.partialorder %v106_v38, 8.507059e+37 }
 0x202   :  { %v134_v33 = vpop.eup %133 }
 0x203   :  { %v98_v34 = vmul.f32 %v134_v33, %v96_v32  ;;  %vm103_vm2 = vweird.f32 %v134_v33 }
 0x204   :  { %vm104_vm4 = vmor %vm102_vm3, %vm103_vm2 }
 0x205   :  { %v99_v35 = vsub.f32 1.0, %v98_v34 }
 0x207   :  { %v100_v37 = vmul.f32 %v134_v33, %v99_v35 }
 0x209   :  { %v101_v39 = vadd.f32 %v134_v33, %v100_v37 }
 0x20b   :  { %v105_v41 = vsel %vm104_vm4, %v134_v33, %v101_v39 }
 0x20c   :  { %v110_v42 = vsel %vm107_vm5, %v109_v40, %v105_v41 }
 0x20d   :  { %v111_v43 = vmul.f32 %v132_v30, %v110_v42 }
 0x20f   :  { %112 = vst.msk [vmem:[#allocation2] sm:$0x1] %vm87_vm1, %v111_v43 }
 0x210   :  { %123 = dma.vmem_to_hbm [thread:$0]  %s119_s3, 16, %s121_s7, [#allocation3]  }
 0x211   :  { %159 = dma.done.wait [#allocation3], 16  }
 0x212   :  { %160 = vsyncadd [#allocation3], 4294967280 }
 0x213   :  { %128 = vsyncpa [#allocation3], 1 }

</bundles_post_ra>
